<compile_context>
chip_gen: v7x
topology: tpu7x:2x2x1
jax: 0.10.0
libtpu: 0.0.40
codegen_flags: <defaults>
</compile_context>

<pallas_src>
import jax
import jax.numpy as jnp
from jax.experimental import pallas as pl
from jax.experimental.pallas import tpu as pltpu


def mlp_kernel(x_ref, w1_ref, b1_ref, w2_ref, b2_ref, w3_ref, o_ref):
    # Fused 3-layer MLP: matmuls on MXU (f32 accumulate), tanh on EUP, all VMEM-resident.
    x = x_ref[...]
    h = jnp.dot(x, w1_ref[...], preferred_element_type=jnp.float32) + b1_ref[...]
    h = jnp.tanh(h)
    h = jnp.dot(h, w2_ref[...], preferred_element_type=jnp.float32) + b2_ref[...]
    h = jnp.tanh(h)
    o_ref[...] = jnp.dot(h, w3_ref[...],
                         preferred_element_type=jnp.float32).astype(o_ref.dtype)


def mlp_pallas(x, w1, b1, w2, b2, w3):
    B, in_dim = x.shape
    hidden = w1.shape[1]
    out_dim = w3.shape[1]

    SUBLANE, LANE = 8, 128
    # Pad batch rows to a sublane multiple; pad output width to a full lane (128)
    # so the single output store is lane-dense (unmasked vst) instead of vst.msk.
    b_pad = ((B + SUBLANE - 1) // SUBLANE) * SUBLANE
    b_pad = max(b_pad, SUBLANE)
    out_pad = ((out_dim + LANE - 1) // LANE) * LANE
    out_pad = max(out_pad, LANE)

    x_p = x if b_pad == B else jnp.pad(x, ((0, b_pad - B), (0, 0)))
    w3_p = w3 if out_pad == out_dim else jnp.pad(w3, ((0, 0), (0, out_pad - out_dim)))

    vmem_spec = pl.BlockSpec(memory_space=pltpu.MemorySpace.VMEM)

    out = pl.pallas_call(
        mlp_kernel,
        out_shape=jax.ShapeDtypeStruct((b_pad, out_pad), jnp.float32),
        in_specs=[vmem_spec] * 6,    # whole arrays resident in VMEM, single step
        out_specs=vmem_spec,
    )(x_p, w1, b1, w2, b2, w3_p)

    return out[:B, :out_dim]


def orthogonal_init(key, out_dim, in_dim):
    """Mimics torch.nn.init.orthogonal_ on a (out, in) weight; returns (in, out)."""
    rows, cols = out_dim, in_dim
    flat = jax.random.normal(key, (max(rows, cols), min(rows, cols)), jnp.float32)
    q, r = jnp.linalg.qr(flat)
    q = q * jnp.sign(jnp.diag(r))[None, :]   # sign correction like PyTorch
    if rows < cols:
        q = q.T
    w_torch_layout = q[:rows, :cols]          # (out, in)
    return w_torch_layout.T.astype(jnp.float32)  # (in, out) for x @ W


def mlp_ref(x, w1, b1, w2, b2, w3):
    h = jnp.tanh(x @ w1 + b1)
    h = jnp.tanh(h @ w2 + b2)
    return h @ w3


if __name__ == "__main__":
    key = jax.random.PRNGKey(0)
    k_x, k1, kb1, k2, kb2, k3 = jax.random.split(key, 6)

    batch, input_dim, hidden_dim, output_dim = 16, 4, 32, 2

    x = jax.random.normal(k_x, (batch, input_dim), jnp.float32)

    # Orthogonal weights (module's init_weights); PyTorch default Linear bias
    # init is uniform(-1/sqrt(fan_in), 1/sqrt(fan_in)).
    w1 = orthogonal_init(k1, hidden_dim, input_dim)           # (in, hidden)
    b1 = jax.random.uniform(kb1, (1, hidden_dim), jnp.float32,
                            -1.0 / jnp.sqrt(input_dim), 1.0 / jnp.sqrt(input_dim))
    w2 = orthogonal_init(k2, hidden_dim, hidden_dim)          # (hidden, hidden)
    b2 = jax.random.uniform(kb2, (1, hidden_dim), jnp.float32,
                            -1.0 / jnp.sqrt(hidden_dim), 1.0 / jnp.sqrt(hidden_dim))
    w3 = orthogonal_init(k3, output_dim, hidden_dim)          # (hidden, out), no bias

    out = mlp_pallas(x, w1, b1, w2, b2, w3)
    out = jax.block_until_ready(out)

    ref = mlp_ref(x, w1, b1, w2, b2, w3)
    assert out.shape == (batch, output_dim)
    assert jnp.allclose(out, ref, atol=1e-5, rtol=1e-5), "mismatch vs JAX reference"

    print("KERNEL_OK")
</pallas_src>

<mosaic_0001>
module attributes {stable_mosaic.version = 11 : i64} {
  func.func @mlp_kernel(%arg0: memref<16x4xf32, #tpu.memory_space<vmem>>, %arg1: memref<4x32xf32, #tpu.memory_space<vmem>>, %arg2: memref<1x32xf32, #tpu.memory_space<vmem>>, %arg3: memref<32x32xf32, #tpu.memory_space<vmem>>, %arg4: memref<1x32xf32, #tpu.memory_space<vmem>>, %arg5: memref<32x128xf32, #tpu.memory_space<vmem>>, %arg6: memref<16x128xf32, #tpu.memory_space<vmem>>) attributes {dimension_semantics = [], scalar_prefetch = 0 : i64, scratch_operands = 0 : i64, tpu.core_type = #tpu.core_type<tc>} {
    %c0 = arith.constant 0 : index
    %c0_0 = arith.constant 0 : index
    %0 = vector.load %arg0[%c0, %c0_0] : memref<16x4xf32, #tpu.memory_space<vmem>>, vector<16x4xf32>
    %c0_1 = arith.constant 0 : index
    %c0_2 = arith.constant 0 : index
    %1 = vector.load %arg1[%c0_1, %c0_2] : memref<4x32xf32, #tpu.memory_space<vmem>>, vector<4x32xf32>
    %cst = arith.constant dense<0.000000e+00> : vector<16x32xf32>
    %2 = tpu.matmul %0, %1, %cst {dimension_numbers = #tpu.dot_dimension_numbers<[1], [0], [0], [1], [0, 0, 1, 1], [], []>} : vector<16x4xf32>, vector<4x32xf32>, vector<16x32xf32> -> vector<16x32xf32>
    %c0_3 = arith.constant 0 : index
    %c0_4 = arith.constant 0 : index
    %3 = vector.load %arg2[%c0_3, %c0_4] : memref<1x32xf32, #tpu.memory_space<vmem>>, vector<1x32xf32>
    %4 = vector.broadcast %3 : vector<1x32xf32> to vector<16x32xf32>
    %5 = arith.addf %2, %4 : vector<16x32xf32>
    %6 = math.tanh %5 : vector<16x32xf32>
    %c0_5 = arith.constant 0 : index
    %c0_6 = arith.constant 0 : index
    %7 = vector.load %arg3[%c0_5, %c0_6] : memref<32x32xf32, #tpu.memory_space<vmem>>, vector<32x32xf32>
    %cst_7 = arith.constant dense<0.000000e+00> : vector<16x32xf32>
    %8 = tpu.matmul %6, %7, %cst_7 {dimension_numbers = #tpu.dot_dimension_numbers<[1], [0], [0], [1], [0, 0, 1, 1], [], []>} : vector<16x32xf32>, vector<32x32xf32>, vector<16x32xf32> -> vector<16x32xf32>
    %c0_8 = arith.constant 0 : index
    %c0_9 = arith.constant 0 : index
    %9 = vector.load %arg4[%c0_8, %c0_9] : memref<1x32xf32, #tpu.memory_space<vmem>>, vector<1x32xf32>
    %10 = vector.broadcast %9 : vector<1x32xf32> to vector<16x32xf32>
    %11 = arith.addf %8, %10 : vector<16x32xf32>
    %12 = math.tanh %11 : vector<16x32xf32>
    %c0_10 = arith.constant 0 : index
    %c0_11 = arith.constant 0 : index
    %13 = vector.load %arg5[%c0_10, %c0_11] : memref<32x128xf32, #tpu.memory_space<vmem>>, vector<32x128xf32>
    %cst_12 = arith.constant dense<0.000000e+00> : vector<16x128xf32>
    %14 = tpu.matmul %12, %13, %cst_12 {dimension_numbers = #tpu.dot_dimension_numbers<[1], [0], [0], [1], [0, 0, 1, 1], [], []>} : vector<16x32xf32>, vector<32x128xf32>, vector<16x128xf32> -> vector<16x128xf32>
    %c0_13 = arith.constant 0 : index
    %c0_14 = arith.constant 0 : index
    %15 = vector.load %arg6[%c0_13, %c0_14] : memref<16x128xf32, #tpu.memory_space<vmem>>, vector<16x128xf32>
    tpu.vector_store %arg6[%c0_13, %c0_14], %14 {strides = array<i32>} : memref<16x128xf32, #tpu.memory_space<vmem>>, vector<16x128xf32>,
    return
  }
}

</mosaic_0001>

<bundles_post_ra>
// kernel: tpu_custom_call.1
= control target key start
LH: loop header
LB: loop body
LE: loop exit
PB: predicated region body
PF: predicated region fallthrough
CT: control target
= control target key end

     0   :  { %11 = vsyncpa [#allocation3], 0  ;;  %s562_s0 = inlined_call_operand.vmem [shape: f32[16,4], index: 0, kind: input, shape index: {}]   ;;  %s563_s1 = inlined_call_operand.vmem [shape: f32[4,32], index: 1, kind: input, shape index: {}]   ;;  %s564_s2 = inlined_call_operand.vmem [shape: f32[1,32], index: 2, kind: input, shape index: {}]   ;;  %s565_s3 = inlined_call_operand.hbm [shape: f32[32,32], index: 3, kind: input, shape index: {}]   ;;  %s566_s4 = inlined_call_operand.vmem [shape: f32[1,32], index: 4, kind: input, shape index: {}]   ;;  %s567_s5 = inlined_call_operand.vmem [shape: f32[32,128], index: 5, kind: input, shape index: {}]   ;;  %s568_s6 = inlined_call_operand.hbm [shape: f32[16,128], index: 6, kind: output, shape index: {}]  }
   0x1   :  { %12 = vsyncpa [#allocation4], 0  ;;  %s462_s21 = smov [#allocation2]   ;;  %s414_s25 = scalar_lea.hbm %s565_s3, 512 }
   0x2   :  { %s24_s22 = sshll.u32 %s462_s21, 4  ;;  %p415_p0 = scmp.ne.s32.totalorder %s565_s3, %s414_s25  ;;  %s25_s22 = int_to_ptr.vmem [resolvable:$true] %s24_s22 }
   0x3   :  { %p418_p1 = scmp.lt.u32.totalorder %s414_s25, %s565_s3 }
   0x5   :  { %p420_p2 = pnand %p418_p1, %p415_p0 }
   0x7   :  { %423 = shalt.err (!%p420_p2)
}
   0x8   :  { %s424_s30 = scalar_lea.vmem %s25_s22, 512  ;;  %p429_p4 = scmp.lt.s32.totalorder %s25_s22, %s25_s22 }
   0x9   :  { %p425_p3 = scmp.ne.s32.totalorder %s25_s22, %s424_s30  ;;  %p430_p5 = scmp.lt.s32.totalorder %s424_s30, %s424_s30 }
   0xb   :  { %p431_p6 = por %p430_p5, %p429_p4 }
   0xd   :  { %p432_p7 = pnand %p431_p6, %p425_p3 }
   0xf   :  { %435 = shalt.err (!%p432_p7)
}
  0x10   :  { %s463_s7 = smov 128   ;;  %s464_s8 = smov 8  }
  0x11   :  { %30 = dma.hbm_to_vmem [thread:$0]  %s565_s3, 512, %s25_s22, [#allocation3], %s463_s7, %s463_s7, %s464_s8  }
  0x12   :  { %458 = dma.done.wait [#allocation3], 512  }
  0x13   :  { %459 = vsyncadd [#allocation3], 4294966784  ;;  %vm55_vm0 = vcmask 1043456   ;;  %vm48_vm1 = vcmask 31744   ;;  %v40_v0 = vld [vmem:[%s563_s1] sm:$0xf] }
  0x14   :  { %v38_v1 = vld [vmem:[%s562_s0] sm:$0xff]  ;;  %v39_v2 = vld [vmem:[%s562_s0 + $0x8] sm:$0xff]  ;;  %359 = vmatprep.subr.msk.mxu0 %vm55_vm0, %v40_v0  ;;  %v138_v5 = vld [vmem:[#allocation2 + $0x10] sm:$0xff]  ;;  %vm147_vm2 = vcmask 261120  }
  0x15   :  { %361 = vmatprep.mubr.msk.f32.mxu0 %vm48_vm1, %v38_v1  ;;  %360 = vmatpush3.msk.msra.mxu0 %vm55_vm0, %v40_v0  ;;  %v136_v3 = vld [vmem:[#allocation2] sm:$0xff]  ;;  %v137_v4 = vld [vmem:[#allocation2 + $0x8] sm:$0xff]  ;;  %v139_v7 = vld [vmem:[#allocation2 + $0x18] sm:$0xff] }
  0x16   :  { %362 = vmatmul.mubr.msk.f32.vlgmr.msra.gmra.mrb[0].mxu0 %vm48_vm1, %v39_v2  ;;  %v386_v6 = vpack.c.bf16 %v137_v4, %v136_v3  ;;  %v390_v8 = vpack.c.bf16 %v139_v7, %v138_v5  ;;  %v335_v9 = vld [vmem:[%s564_s2] ss:$0 sm:$0xff]  ;;  %v232_v17 = vld [vmem:[%s567_s5 + $0x8] sm:$0xff]  ;;  %v233_v18 = vld [vmem:[%s567_s5 + $0x10] sm:$0xff] }
  0x17   :  { %v231_v16 = vld [vmem:[%s567_s5] sm:$0xff]  ;;  %v234_v20 = vld [vmem:[%s567_s5 + $0x18] sm:$0xff]  ;;  %s465_s5 = smov [#allocation5]  }
  0x18   :  { %387 = vmatprep.subr.bf16.mxu1 %v386_v6  ;;  %v394_v19 = vpack.c.bf16 %v232_v17, %v231_v16  ;;  %v398_v21 = vpack.c.bf16 %v234_v20, %v233_v18  ;;  %v339_v22 = vld [vmem:[%s566_s4] ss:$0 sm:$0xff]  ;;  %s323_s25 = sshll.u32 %s465_s5, 4  ;;  %s324_s25 = int_to_ptr.vmem [resolvable:$true] %s323_s25 }
  0x19   :  { %389 = vmatpush3.bf16.msra.mxu1 %v386_v6  ;;  %s436_s4 = scalar_lea.vmem %s324_s25, 256  ;;  %p441_p9 = scmp.lt.s32.totalorder %s324_s25, %s324_s25 }
  0x1a   :  { %391 = vmatprep.subr.bf16.mxu1 %v390_v8  ;;  %395 = vmatprep.subr.bf16.mxu0 %v394_v19  ;;  %p437_p8 = scmp.ne.s32.totalorder %s324_s25, %s436_s4  ;;  %p442_p10 = scmp.lt.s32.totalorder %s436_s4, %s436_s4 }
  0x1b   :  { %397 = vmatpush3.bf16.msra.mxu0 %v394_v19 }
  0x1c   :  { %399 = vmatprep.subr.bf16.mxu0 %v398_v21  ;;  %p443_p11 = por %p442_p10, %p441_p9 }
  0x1d   :  { %393 = vmatpush3.bf16.msra.mxu1 %v390_v8 }
  0x1e   :  { %p444_p12 = pnand %p443_p11, %p437_p8 }
  0x1f   :  { %401 = vmatpush3.bf16.msra.mxu0 %v398_v21 }
  0xe9   :  { %v363_v10 = vpop.f32.mrb[0].mxu0 }
  0xea   :  { %v131_v11 = vadd.f32 %v363_v10, %v335_v9  ;;  %v125_v12 = vpop.f32.mrb[1].mxu0 }
  0xeb   :  { %v126_v13 = vadd.f32 %v335_v9, %v125_v12 }
  0xed   :  { %406 = vtanh.f32 %v126_v13 }
  0xee   :  { %408 = vtanh.f32 %v131_v11 }
  0xf7   :  { %v407_v14 = vpop.eup %406 }
  0xf8   :  { %v409_v15 = vpop.eup %408  ;;  %372 = vmatprep.mubr.msk.f32.mxu1 %vm147_vm2, %v407_v14 }
  0xf9   :  { %373 = vmatmul.mubr.msk.f32.vlgmr.msra.gmra.mrb[0].mxu1 %vm147_vm2, %v409_v15 }
 0x1cc   :  { %v374_v23 = vpop.f32.mrb[0].mxu1 }
 0x1cd   :  { %v226_v24 = vadd.f32 %v374_v23, %v339_v22  ;;  %v220_v25 = vpop.f32.mrb[1].mxu1 }
 0x1ce   :  { %v221_v26 = vadd.f32 %v339_v22, %v220_v25 }
 0x1d0   :  { %410 = vtanh.f32 %v221_v26 }
 0x1d1   :  { %412 = vtanh.f32 %v226_v24 }
 0x1da   :  { %v411_v27 = vpop.eup %410 }
 0x1db   :  { %v413_v28 = vpop.eup %412  ;;  %383 = vmatprep.mubr.msk.f32.mxu0 %vm147_vm2, %v411_v27 }
 0x1dc   :  { %384 = vmatmul.mubr.msk.f32.vlgmr.msra.gmra.mrb[2].mxu0 %vm147_vm2, %v413_v28 }
 0x2af   :  { %v385_v29 = vpop.f32.mrb[2].mxu0 }
 0x2b0   :  { %317 = vst [vmem:[#allocation5 + $0x8] sm:$0xff] %v385_v29  ;;  %v307_v30 = vpop.f32.mrb[3].mxu0 }
 0x2b1   :  { %316 = vst [vmem:[#allocation5] sm:$0xff] %v307_v30 }
 0x2b2   :  { %447 = shalt.err (!%p444_p12)
}
 0x2b3   :  { %s448_s28 = scalar_lea.hbm %s568_s6, 256 }
 0x2b4   :  { %p449_p13 = scmp.ne.s32.totalorder %s568_s6, %s448_s28  ;;  %p452_p0 = scmp.lt.u32.totalorder %s448_s28, %s568_s6 }
 0x2b6   :  { %p454_p1 = pnand %p452_p0, %p449_p13 }
 0x2b8   :  { %457 = shalt.err (!%p454_p1)
}
 0x2b9   :  { %329 = dma.vmem_to_hbm [thread:$0]  %s324_s25, 256, %s568_s6, [#allocation4], %s463_s7, %s463_s7, %s464_s8  }
 0x2ba   :  { %460 = dma.done.wait [#allocation4], 256  }
 0x2bb   :  { %461 = vsyncadd [#allocation4], 4294967040 }
 0x2bc   :  { %333 = vsyncpa [#allocation3], 1 }
 0x2bd   :  { %334 = vsyncpa [#allocation4], 1 }

</bundles_post_ra>
